<compile_context>
chip_gen: v7x
topology: tpu7x:2x2x1
jax: 0.10.0
libtpu: 0.0.40
codegen_flags: <defaults>
</compile_context>

<pallas_src>
import functools
import math

import jax
import jax.numpy as jnp
from jax.experimental import pallas as pl
from jax.experimental.pallas import tpu as pltpu

LANE = 128


def _sublane_pack(dtype) -> int:
    # f32 -> 8, bf16/f16 -> 16, int8/fp8 -> 32 sublanes per packed vreg row.
    return max(8, 32 // jnp.dtype(dtype).itemsize)


def _round_up(a: int, m: int) -> int:
    return (a + m - 1) // m * m


def _round_down(a: int, m: int) -> int:
    return a // m * m


def _vmem_cap_bytes(headroom: int = 16 << 20) -> int:
    """Physical VMEM minus headroom (~48 MiB on v7x, ~112 MiB on v5e/v6e)."""
    try:
        cap = int(pltpu.get_tpu_info().vmem_capacity_bytes)
    except Exception:  # pragma: no cover - conservative fallback
        cap = 64 << 20
    return max(cap - headroom, 32 << 20)


# ---------------------------------------------------------------------------
# Kernels
# ---------------------------------------------------------------------------
def _head_kernel(x_ref, w1_ref, b1_ref, w2_ref, b2_ref, o_ref, *, compute_dtype):
    """Fused path: full [H, H] weight resident in VMEM, 1-D grid over batch."""
    x = x_ref[...].astype(compute_dtype)              # in-kernel cast (no HBM copy)
    h = jnp.dot(x, w1_ref[...], preferred_element_type=jnp.float32) + b1_ref[...]
    h = jnp.tanh(h)                                   # f32 transcendental
    out = jnp.dot(h.astype(compute_dtype), w2_ref[...],
                  preferred_element_type=jnp.float32) + b2_ref[...]
    o_ref[...] = out.astype(o_ref.dtype)


def _head_kernel_ksplit(x_ref, w1_ref, b1_ref, w2_ref, b2_ref, o_ref, acc_ref, *,
                        compute_dtype):
    """K-split path: grid (nb, nk), w1 tiled (TK, H), f32 accumulator scratch."""
    k = pl.program_id(1)

    @pl.when(k == 0)
    def _():
        acc_ref[...] = jnp.zeros_like(acc_ref)

    x = x_ref[...].astype(compute_dtype)
    acc_ref[...] += jnp.dot(x, w1_ref[...], preferred_element_type=jnp.float32)

    @pl.when(k == pl.num_programs(1) - 1)
    def _():
        h = jnp.tanh(acc_ref[...] + b1_ref[...])
        out = jnp.dot(h.astype(compute_dtype), w2_ref[...],
                      preferred_element_type=jnp.float32) + b2_ref[...]
        o_ref[...] = out.astype(o_ref.dtype)


# ---------------------------------------------------------------------------
# Parameter preparation (one-time; NOT per forward step)
# ---------------------------------------------------------------------------
def prepare_params(w1, b1, w2, b2, compute_dtype=jnp.float32):
    """w1: [H, H] torch Linear weight, b1: [H]; w2: [L, H], b2: [L].

    Returns (w1_t, b1_r, w2_t, b2_r, L): weights pre-transposed for lane-dense
    x @ W, output dim zero-padded to 128 lanes, weights cast to compute_dtype,
    biases kept f32.
    """
    H = w1.shape[1]
    L = w2.shape[0]
    Lp = max(LANE, _round_up(L, LANE))
    w1_t = jnp.asarray(w1).T.astype(compute_dtype)                       # [H, H]
    w2_t = jnp.zeros((H, Lp), compute_dtype).at[:, :L].set(
        jnp.asarray(w2).T.astype(compute_dtype))                         # [H, Lp]
    b1_r = jnp.asarray(b1).reshape(1, H).astype(jnp.float32)             # [1, H]
    b2_r = jnp.zeros((1, Lp), jnp.float32).at[:, :L].set(
        jnp.asarray(b2).astype(jnp.float32))                             # [1, Lp]
    return w1_t, b1_r, w2_t, b2_r, L


# ---------------------------------------------------------------------------
# Forward
# ---------------------------------------------------------------------------
@functools.partial(jax.jit, static_argnames=("n_labels", "block_b", "block_k"))
def classification_head(x, w1_t, b1_r, w2_t, b2_r, *, n_labels,
                        block_b=512, block_k=None):
    """x: [B, H] (any float dtype). Params from prepare_params(). Returns [B, n_labels]."""
    B, H = x.shape
    Lp = w2_t.shape[1]
    compute_dtype = jnp.dtype(w1_t.dtype)
    out_dtype = x.dtype

    x_sz = jnp.dtype(x.dtype).itemsize
    cd_sz = compute_dtype.itemsize
    out_sz = jnp.dtype(out_dtype).itemsize

    # Batch tile: multiple of the lcm of the input/compute/output sublane packs.
    pack = math.lcm(_sublane_pack(x.dtype), _sublane_pack(compute_dtype),
                    _sublane_pack(out_dtype))
    if B >= pack:
        TB = min(_round_up(block_b, pack), _round_down(B, pack))
        x_in, B_eff = x, B          # ragged tail handled by a partial final tile
    else:
        TB = pack                   # tiny batch: pad up to one sublane pack only
        x_in = jnp.pad(x, ((0, pack - B), (0, 0)))
        B_eff = pack
    nb = pl.cdiv(B_eff, TB)

    # ---- VMEM budget (double-buffered pipeline stages + kernel temps) ----
    def budget(tb, tk, ksplit):
        b = 2 * (tb * tk * x_sz          # x tile
                 + tk * H * cd_sz        # w1 tile
                 + H * Lp * cd_sz        # w2 (resident)
                 + H * 4 + Lp * 4        # biases (f32)
                 + tb * Lp * out_sz)     # out tile
        b += tb * H * 4                  # f32 pre-activation / tanh temp
        b += tb * H * cd_sz              # compute-dtype cast of h for out_proj
        b += tb * tk * cd_sz             # in-kernel x cast
        if ksplit:
            b += tb * H * 4              # f32 accumulator scratch
        return b + (2 << 20)             # slack for Mosaic internals

    cap = _vmem_cap_bytes()

    # ---- choose K tiling (full-H resident weight vs K-split) ----
    if block_k is not None and block_k < H:
        if block_k % LANE != 0 or H % block_k != 0:
            raise ValueError("block_k must be a multiple of 128 that divides hidden_dim")
        TK, ksplit = block_k, True
    elif budget(TB, H, False) <= cap:
        TK, ksplit = H, False
    else:
        TK, ksplit = H, False
        if H % LANE == 0:
            for cand in range(H // LANE - 1, 0, -1):
                tk = cand * LANE
                if H % tk != 0:
                    continue
                TK, ksplit = tk, True
                if budget(TB, tk, True) <= cap:
                    break

    vmem_bytes = int(min(max(budget(TB, TK, ksplit), 32 << 20), cap))

    cost = pl.CostEstimate(
        flops=int(2 * B * H * (H + Lp)),
        transcendentals=int(B * H),
        bytes_accessed=int(B * H * x_sz + H * H * cd_sz + H * Lp * cd_sz
                           + (H + Lp) * 4 + B * Lp * out_sz),
    )

    # Megacore: only shard the batch axis if each TC gets enough tiles to
    # amortize its own copy of the weight DMA.
    batch_sem = "parallel" if nb >= 8 else "arbitrary"

    if ksplit:
        nk = H // TK
        grid = (nb, nk)
        in_specs = [
            pl.BlockSpec((TB, TK), lambda i, k: (i, k)),   # x tile (pipelined)
            pl.BlockSpec((TK, H), lambda i, k: (k, 0)),    # w1 K-tile (pipelined)
            pl.BlockSpec((1, H), lambda i, k: (0, 0)),     # b1 resident
            pl.BlockSpec((H, Lp), lambda i, k: (0, 0)),    # w2 resident
            pl.BlockSpec((1, Lp), lambda i, k: (0, 0)),    # b2 resident
        ]
        out_specs = pl.BlockSpec((TB, Lp), lambda i, k: (i, 0))
        scratch_shapes = [pltpu.VMEM((TB, H), jnp.float32)]
        dim_sem = (batch_sem, "arbitrary")
        kernel = functools.partial(_head_kernel_ksplit, compute_dtype=compute_dtype)
    else:
        grid = (nb,)
        in_specs = [
            pl.BlockSpec((TB, H), lambda i: (i, 0)),       # x tile (pipelined)
            pl.BlockSpec((H, H), lambda i: (0, 0)),        # w1 resident
            pl.BlockSpec((1, H), lambda i: (0, 0)),        # b1 resident
            pl.BlockSpec((H, Lp), lambda i: (0, 0)),       # w2 resident
            pl.BlockSpec((1, Lp), lambda i: (0, 0)),       # b2 resident
        ]
        out_specs = pl.BlockSpec((TB, Lp), lambda i: (i, 0))
        scratch_shapes = []
        dim_sem = (batch_sem,)
        kernel = functools.partial(_head_kernel, compute_dtype=compute_dtype)

    out_padded = pl.pallas_call(
        kernel,
        out_shape=jax.ShapeDtypeStruct((B_eff, Lp), out_dtype),
        grid=grid,
        in_specs=in_specs,
        out_specs=out_specs,
        scratch_shapes=scratch_shapes,
        compiler_params=pltpu.CompilerParams(
            dimension_semantics=dim_sem,
            vmem_limit_bytes=vmem_bytes,
        ),
        cost_estimate=cost,
    )(x_in, w1_t, b1_r, w2_t, b2_r)

    return out_padded[:B, :n_labels]


# ---------------------------------------------------------------------------
# Reference + tests
# ---------------------------------------------------------------------------
def _reference(x, w1, b1, w2, b2):
    h = jnp.tanh(x @ w1.T + b1)
    return h @ w2.T + b2


def _make_inputs(key, B, H, L):
    kx, k1, k2, k3, k4 = jax.random.split(key, 5)
    x = jax.random.normal(kx, (B, H), dtype=jnp.float32)
    bound = 1.0 / (H ** 0.5)
    w1 = jax.random.uniform(k1, (H, H), minval=-bound, maxval=bound, dtype=jnp.float32)
    b1 = jax.random.uniform(k2, (H,), minval=-bound, maxval=bound, dtype=jnp.float32)
    w2 = jax.random.uniform(k3, (L, H), minval=-bound, maxval=bound, dtype=jnp.float32)
    b2 = jax.random.uniform(k4, (L,), minval=-bound, maxval=bound, dtype=jnp.float32)
    return x, w1, b1, w2, b2


if __name__ == "__main__":
    key = jax.random.PRNGKey(0)
    k_a, k_b, k_c = jax.random.split(key, 3)

    # --- Test 1: f32 fused path (B=8, H=32, L=4) ---
    x, w1, b1, w2, b2 = _make_inputs(k_a, 8, 32, 4)
    ref = _reference(x, w1, b1, w2, b2)
    p_f32 = prepare_params(w1, b1, w2, b2, compute_dtype=jnp.float32)
    out = jax.block_until_ready(
        classification_head(x, *p_f32[:4], n_labels=p_f32[4]))
    assert out.shape == (8, 4)
    assert jnp.allclose(out, ref, atol=1e-5, rtol=1e-5), "f32 fused mismatch"

    # --- Test 2: bf16 compute path (exercises the tiny-batch pad-to-pack case) ---
    p_bf16 = prepare_params(w1, b1, w2, b2, compute_dtype=jnp.bfloat16)
    out_bf16 = jax.block_until_ready(
        classification_head(x, *p_bf16[:4], n_labels=p_bf16[4]))
    assert out_bf16.shape == (8, 4)
    assert jnp.allclose(out_bf16.astype(jnp.float32), ref, atol=5e-2, rtol=5e-2), \
        "bf16 fused mismatch"

    # --- Test 3: K-split path (B=16, H=256, block_k=128 -> 2 K tiles) ---
    x3, w1_3, b1_3, w2_3, b2_3 = _make_inputs(k_b, 16, 256, 4)
    ref3 = _reference(x3, w1_3, b1_3, w2_3, b2_3)
    p3 = prepare_params(w1_3, b1_3, w2_3, b2_3, compute_dtype=jnp.float32)
    out_fused = jax.block_until_ready(
        classification_head(x3, *p3[:4], n_labels=p3[4]))
    out_split = jax.block_until_ready(
        classification_head(x3, *p3[:4], n_labels=p3[4], block_k=128))
    assert out_split.shape == (16, 4)
    assert jnp.allclose(out_split, out_fused, atol=1e-4, rtol=1e-4), \
        "K-split vs fused mismatch"
    assert jnp.allclose(out_split, ref3, atol=5e-3, rtol=5e-3), \
        "K-split vs reference mismatch"

    # --- Test 4: ragged batch (B=20, TB=16 -> partial final tile, no full pad) ---
    x4, w1_4, b1_4, w2_4, b2_4 = _make_inputs(k_c, 20, 32, 4)
    ref4 = _reference(x4, w1_4, b1_4, w2_4, b2_4)
    p4 = prepare_params(w1_4, b1_4, w2_4, b2_4, compute_dtype=jnp.float32)
    out4 = jax.block_until_ready(
        classification_head(x4, *p4[:4], n_labels=p4[4], block_b=16))
    assert out4.shape == (20, 4)
    assert jnp.allclose(out4, ref4, atol=1e-5, rtol=1e-5), "ragged-batch mismatch"

    print("KERNEL_OK")
</pallas_src>

<mosaic_0001>
module attributes {stable_mosaic.version = 11 : i64} {
  func.func @_head_kernel(%arg0: i32, %arg1: memref<8x32xf32, #tpu.memory_space<vmem>>, %arg2: memref<32x32xf32, #tpu.memory_space<vmem>>, %arg3: memref<1x32xf32, #tpu.memory_space<vmem>>, %arg4: memref<32x128xf32, #tpu.memory_space<vmem>>, %arg5: memref<1x128xf32, #tpu.memory_space<vmem>>, %arg6: memref<8x128xf32, #tpu.memory_space<vmem>>) attributes {dimension_semantics = [#tpu.dimension_semantics<arbitrary>], iteration_bounds = array<i64: 1>, scalar_prefetch = 0 : i64, scratch_operands = 0 : i64, tpu.core_type = #tpu.core_type<tc>, window_params = [{transform_indices = @transform_0, window_bounds = array<i64: 8, 32>}, {pipeline_mode = #tpu.pipeline_mode<synchronous>, transform_indices = @transform_1, window_bounds = array<i64: 32, 32>}, {pipeline_mode = #tpu.pipeline_mode<synchronous>, transform_indices = @transform_2, window_bounds = array<i64: 1, 32>}, {pipeline_mode = #tpu.pipeline_mode<synchronous>, transform_indices = @transform_3, window_bounds = array<i64: 32, 128>}, {pipeline_mode = #tpu.pipeline_mode<synchronous>, transform_indices = @transform_4, window_bounds = array<i64: 1, 128>}, {transform_indices = @transform_5, window_bounds = array<i64: 8, 128>}]} {
    %c0 = arith.constant 0 : index
    %c0_0 = arith.constant 0 : index
    %0 = vector.load %arg1[%c0, %c0_0] : memref<8x32xf32, #tpu.memory_space<vmem>>, vector<8x32xf32>
    %c0_1 = arith.constant 0 : index
    %c0_2 = arith.constant 0 : index
    %1 = vector.load %arg2[%c0_1, %c0_2] : memref<32x32xf32, #tpu.memory_space<vmem>>, vector<32x32xf32>
    %cst = arith.constant dense<0.000000e+00> : vector<8x32xf32>
    %2 = tpu.matmul %0, %1, %cst {dimension_numbers = #tpu.dot_dimension_numbers<[1], [0], [0], [1], [0, 0, 1, 1], [], []>} : vector<8x32xf32>, vector<32x32xf32>, vector<8x32xf32> -> vector<8x32xf32>
    %c0_3 = arith.constant 0 : index
    %c0_4 = arith.constant 0 : index
    %3 = vector.load %arg3[%c0_3, %c0_4] : memref<1x32xf32, #tpu.memory_space<vmem>>, vector<1x32xf32>
    %4 = vector.broadcast %3 : vector<1x32xf32> to vector<8x32xf32>
    %5 = arith.addf %2, %4 : vector<8x32xf32>
    %6 = math.tanh %5 : vector<8x32xf32>
    %c0_5 = arith.constant 0 : index
    %c0_6 = arith.constant 0 : index
    %7 = vector.load %arg4[%c0_5, %c0_6] : memref<32x128xf32, #tpu.memory_space<vmem>>, vector<32x128xf32>
    %cst_7 = arith.constant dense<0.000000e+00> : vector<8x128xf32>
    %8 = tpu.matmul %6, %7, %cst_7 {dimension_numbers = #tpu.dot_dimension_numbers<[1], [0], [0], [1], [0, 0, 1, 1], [], []>} : vector<8x32xf32>, vector<32x128xf32>, vector<8x128xf32> -> vector<8x128xf32>
    %c0_8 = arith.constant 0 : index
    %c0_9 = arith.constant 0 : index
    %9 = vector.load %arg5[%c0_8, %c0_9] : memref<1x128xf32, #tpu.memory_space<vmem>>, vector<1x128xf32>
    %10 = vector.broadcast %9 : vector<1x128xf32> to vector<8x128xf32>
    %11 = arith.addf %8, %10 : vector<8x128xf32>
    %c0_10 = arith.constant 0 : index
    %c0_11 = arith.constant 0 : index
    %12 = vector.load %arg6[%c0_10, %c0_11] : memref<8x128xf32, #tpu.memory_space<vmem>>, vector<8x128xf32>
    tpu.vector_store %arg6[%c0_10, %c0_11], %11 {strides = array<i32>} : memref<8x128xf32, #tpu.memory_space<vmem>>, vector<8x128xf32>,
    return
  }
  func.func @transform_0(%arg0: i32) -> (i32, i32) {
    %c0_i32 = arith.constant 0 : i32
    %c0_i32_0 = arith.constant 0 : i32
    return %arg0, %c0_i32 : i32, i32
  }
  func.func @transform_1(%arg0: i32) -> (i32, i32) {
    %c0_i32 = arith.constant 0 : i32
    %c0_i32_0 = arith.constant 0 : i32
    %c0_i32_1 = arith.constant 0 : i32
    return %c0_i32, %c0_i32_0 : i32, i32
  }
  func.func @transform_2(%arg0: i32) -> (i32, i32) {
    %c0_i32 = arith.constant 0 : i32
    %c0_i32_0 = arith.constant 0 : i32
    %c0_i32_1 = arith.constant 0 : i32
    return %c0_i32, %c0_i32_0 : i32, i32
  }
  func.func @transform_3(%arg0: i32) -> (i32, i32) {
    %c0_i32 = arith.constant 0 : i32
    %c0_i32_0 = arith.constant 0 : i32
    %c0_i32_1 = arith.constant 0 : i32
    return %c0_i32, %c0_i32_0 : i32, i32
  }
  func.func @transform_4(%arg0: i32) -> (i32, i32) {
    %c0_i32 = arith.constant 0 : i32
    %c0_i32_0 = arith.constant 0 : i32
    %c0_i32_1 = arith.constant 0 : i32
    return %c0_i32, %c0_i32_0 : i32, i32
  }
  func.func @transform_5(%arg0: i32) -> (i32, i32) {
    %c0_i32 = arith.constant 0 : i32
    %c0_i32_0 = arith.constant 0 : i32
    return %arg0, %c0_i32 : i32, i32
  }
}

</mosaic_0001>

<bundles_post_ra>
// kernel: classification_head.1
= control target key start
LH: loop header
LB: loop body
LE: loop exit
PB: predicated region body
PF: predicated region fallthrough
CT: control target
= control target key end

     0   :  { %10 = vsyncpa [#allocation3], 0  ;;  %s456_s0 = inlined_call_operand.hbm [shape: f32[8,32], index: 0, kind: input, shape index: {}]   ;;  %s457_s1 = inlined_call_operand.hbm [shape: f32[32,32], index: 1, kind: input, shape index: {}]   ;;  %s458_s2 = inlined_call_operand.vmem [shape: f32[1,32], index: 2, kind: input, shape index: {}]   ;;  %s459_s3 = inlined_call_operand.hbm [shape: f32[32,128], index: 3, kind: input, shape index: {}]   ;;  %s460_s4 = inlined_call_operand.vmem [shape: f32[1,128], index: 4, kind: input, shape index: {}]   ;;  %s461_s5 = inlined_call_operand.vmem [shape: f32[8,128], index: 5, kind: output, shape index: {}]  }
   0x1   :  { %11 = vsyncpa [#allocation5], 0  ;;  %s365_s18 = smov [#allocation4]   ;;  %s295_s22 = scalar_lea.hbm %s457_s1, 512 }
   0x2   :  { %s27_s19 = sshll.u32 %s365_s18, 4  ;;  %p296_p0 = scmp.ne.s32.totalorder %s457_s1, %s295_s22  ;;  %s28_s19 = int_to_ptr.vmem [resolvable:$true] %s27_s19 }
   0x3   :  { %p299_p1 = scmp.lt.u32.totalorder %s295_s22, %s457_s1 }
   0x5   :  { %p301_p2 = pnand %p299_p1, %p296_p0 }
   0x7   :  { %304 = shalt.err (!%p301_p2)
}
   0x8   :  { %s305_s27 = scalar_lea.vmem %s28_s19, 512  ;;  %p310_p4 = scmp.lt.s32.totalorder %s28_s19, %s28_s19 }
   0x9   :  { %p306_p3 = scmp.ne.s32.totalorder %s28_s19, %s305_s27  ;;  %p311_p5 = scmp.lt.s32.totalorder %s305_s27, %s305_s27 }
   0xb   :  { %p312_p6 = por %p311_p5, %p310_p4 }
   0xd   :  { %p313_p7 = pnand %p312_p6, %p306_p3 }
   0xf   :  { %316 = shalt.err (!%p313_p7)
}
  0x10   :  { %s366_s28 = smov 128   ;;  %s367_s29 = smov 8  }
  0x11   :  { %33 = dma.hbm_to_vmem [thread:$0]  %s457_s1, 512, %s28_s19, [#allocation5], %s366_s28, %s366_s28, %s367_s29  }
  0x12   :  { %s368_s7 = smov [#allocation2]   ;;  %s369_s9 = smov [#allocation6]  }
  0x13   :  { %s18_s8 = sshll.u32 %s368_s7, 4  ;;  %s41_s10 = sshll.u32 %s369_s9, 4  ;;  %s19_s8 = int_to_ptr.vmem [resolvable:$true] %s18_s8  ;;  %s42_s10 = int_to_ptr.vmem [resolvable:$true] %s41_s10 }
  0x14   :  { %s317_s13 = scalar_lea.hbm %s456_s0, 128 }
  0x15   :  { %p318_p8 = scmp.ne.s32.totalorder %s456_s0, %s317_s13  ;;  %p321_p9 = scmp.lt.u32.totalorder %s317_s13, %s456_s0 }
  0x17   :  { %p323_p10 = pnand %p321_p9, %p318_p8 }
  0x19   :  { %326 = shalt.err (!%p323_p10)
}
  0x1a   :  { %s327_s1 = scalar_lea.vmem %s19_s8, 128  ;;  %p332_p12 = scmp.lt.s32.totalorder %s19_s8, %s19_s8 }
  0x1b   :  { %p328_p11 = scmp.ne.s32.totalorder %s19_s8, %s327_s1  ;;  %p333_p13 = scmp.lt.s32.totalorder %s327_s1, %s327_s1 }
  0x1d   :  { %p334_p0 = por %p333_p13, %p332_p12 }
  0x1f   :  { %p335_p1 = pnand %p334_p0, %p328_p11 }
  0x21   :  { %338 = shalt.err (!%p335_p1)
}
  0x22   :  { %21 = dma.hbm_to_vmem [thread:$0]  %s456_s0, 128, %s19_s8, [#allocation3]  }
  0x23   :  { %s339_s22 = scalar_lea.hbm %s459_s3, 512 }
  0x24   :  { %p340_p2 = scmp.ne.s32.totalorder %s459_s3, %s339_s22  ;;  %p343_p3 = scmp.lt.u32.totalorder %s339_s22, %s459_s3 }
  0x26   :  { %p345_p4 = pnand %p343_p3, %p340_p2 }
  0x28   :  { %348 = shalt.err (!%p345_p4)
}
  0x29   :  { %s349_s27 = scalar_lea.vmem %s42_s10, 512  ;;  %p354_p6 = scmp.lt.s32.totalorder %s42_s10, %s42_s10 }
  0x2a   :  { %p350_p5 = scmp.ne.s32.totalorder %s42_s10, %s349_s27  ;;  %p355_p7 = scmp.lt.s32.totalorder %s349_s27, %s349_s27 }
  0x2c   :  { %p356_p8 = por %p355_p7, %p354_p6 }
  0x2e   :  { %p357_p9 = pnand %p356_p8, %p350_p5 }
  0x30   :  { %360 = shalt.err (!%p357_p9)
}
  0x31   :  { %47 = dma.hbm_to_vmem [thread:$0]  %s459_s3, 512, %s42_s10, [#allocation5], %s366_s28, %s366_s28, %s367_s29  }
  0x32   :  { %361 = dma.done.wait [#allocation3], 128  }
  0x33   :  { %362 = vsyncadd [#allocation3], 4294967168 }
  0x34   :  { %363 = dma.done.wait [#allocation5], 1024  }
  0x35   :  { %364 = vsyncadd [#allocation5], 4294966272  ;;  %v370_v0 = vmov 0.0|0.0   ;;  %vm371_vm0 = vmmov 0   ;;  %v372_v1 = vmov 0.0   ;;  %v60_v2 = vld [vmem:[#allocation4] sm:$0xff] }
  0x36   :  { %273 = vmatprep.subr.bf16.mxu0 %v370_v0  ;;  %259 = vmatprep.mubr.msk.f32.mxu0 %vm371_vm0, %v372_v1  ;;  %v61_v3 = vld [vmem:[#allocation4 + $0x8] sm:$0xff]  ;;  %v62_v4 = vld [vmem:[#allocation4 + $0x10] sm:$0xff]  ;;  %v63_v6 = vld [vmem:[#allocation4 + $0x18] sm:$0xff]  ;;  %vm71_vm1 = vcmask 261120  }
  0x37   :  { %279 = vmatprep.subr.bf16.mxu1 %v370_v0  ;;  %270 = vmatprep.mubr.msk.f32.mxu1 %vm371_vm0, %v372_v1  ;;  %v274_v5 = vpack.c.bf16 %v61_v3, %v60_v2  ;;  %v277_v7 = vpack.c.bf16 %v63_v6, %v62_v4  ;;  %v59_v8 = vld [vmem:[#allocation2] sm:$0xff]  ;;  %v146_v9 = vld [vmem:[#allocation6] sm:$0xff]  ;;  %v147_v10 = vld [vmem:[#allocation6 + $0x8] sm:$0xff] }
  0x38   :  { %v148_v11 = vld [vmem:[#allocation6 + $0x10] sm:$0xff]  ;;  %v280_v12 = vpack.c.bf16 %v147_v10, %v146_v9  ;;  %v149_v13 = vld [vmem:[#allocation6 + $0x18] sm:$0xff] }
  0x39   :  { %275 = vmatpush3.bf16.msra.mxu0 %v274_v5  ;;  %v283_v14 = vpack.c.bf16 %v149_v13, %v148_v11  ;;  %v237_v15 = vld [vmem:[%s458_s2] ss:$0 sm:$0xff] }
  0x3a   :  { %276 = vmatprep.subr.bf16.mxu0 %v370_v0  ;;  %281 = vmatpush3.bf16.msra.mxu1 %v280_v12  ;;  %v239_v20 = vld [vmem:[%s460_s4] ss:$0 sm:$0xff] }
  0x3b   :  { %282 = vmatprep.subr.bf16.mxu1 %v370_v0 }
  0x3d   :  { %278 = vmatpush3.bf16.msra.mxu0 %v277_v7 }
  0x3e   :  { %284 = vmatpush3.bf16.msra.mxu1 %v283_v14 }
  0x40   :  { %260 = vmatmul.mubr.msk.f32.vlgmr.msra.gmra.mrb[0].mxu0 %vm71_vm1, %v59_v8 }
 0x113   :  { %v141_v16 = vpop.f32.mrb[0].mxu0 }
 0x114   :  { %v142_v17 = vadd.f32 %v237_v15, %v141_v16  ;;  %v261_v18 = vpop.f32.mrb[1].mxu0 }
 0x116   :  { %293 = vtanh.f32 %v142_v17 }
 0x120   :  { %v294_v19 = vpop.eup %293 }
 0x121   :  { %271 = vmatmul.mubr.msk.f32.vlgmr.msra.gmra.mrb[0].mxu1 %vm71_vm1, %v294_v19 }
 0x1f4   :  { %v226_v21 = vpop.f32.mrb[0].mxu1 }
 0x1f5   :  { %v227_v22 = vadd.f32 %v239_v20, %v226_v21  ;;  %v272_v23 = vpop.f32.mrb[1].mxu1 }
 0x1f7   :  { %230 = vst [vmem:[%s461_s5] sm:$0xff] %v227_v22 }
 0x1f8   :  { %235 = vsyncpa [#allocation3], 1 }
 0x1f9   :  { %236 = vsyncpa [#allocation5], 1 }

</bundles_post_ra>
